<compile_context>
chip_gen: v6e
topology: v6e:2x2x1
jax: 0.10.0
libtpu: 0.0.40
codegen_flags: <defaults>
</compile_context>

<pallas_src>
import math
import functools

import jax
import jax.numpy as jnp
from jax import lax
from jax.experimental import pallas as pl
from jax.experimental.pallas import tpu as pltpu


# ---------------------------------------------------------------------------
# Unified row-gather kernel: DMA rows into out_ref, then one dense scale pass.
# Works with the table either as a VMEM-resident block (Path A) or a raw
# HBM ref (Path B) -- only the DMA source memory space differs.
# ---------------------------------------------------------------------------
def _embed_gather_kernel(ids_ref, tbl_ref, out_ref, sems, *, tile, scale, depth):
    base = pl.program_id(0) * tile

    def row_copy(t, tok, slot):
        return pltpu.make_async_copy(
            tbl_ref.at[pl.ds(tok, 1), :],      # (1, d_model) source row
            out_ref.at[pl.ds(t, 1), :],        # lands straight in the output block
            sems.at[slot],
        )

    # Prime the gather pipeline with `depth` outstanding row DMAs.
    for t in range(depth):
        row_copy(t, ids_ref[base + t], t).start()

    def body(t, carry):
        slot = lax.rem(t, depth)
        t_next = t + depth
        # Read BOTH token ids before the wait: .wait() breaks SMEM sst->sld forwarding.
        tok_t = ids_ref[base + t]
        tok_next = ids_ref[base + jnp.minimum(t_next, tile - 1)]

        # Wait for row t to land in out_ref (real source index -> real descriptor).
        row_copy(t, tok_t, slot).wait()

        # Keep `depth` row fetches in flight by refilling the freed slot.
        @pl.when(t_next < tile)
        def _():
            row_copy(t_next, tok_next, slot).start()

        return carry

    lax.fori_loop(0, tile, body, 0)

    # One dense scale pass over the whole (tile, d_model) slab: lane/sublane-dense
    # loads and unmasked stores instead of per-row masked stores.
    out_ref[...] = (out_ref[...].astype(jnp.float32) * scale).astype(out_ref.dtype)


def input_embeddings(ids, emb_table, *, table_in_vmem=None, tile=None, depth=None):
    """ids: (batch, seq) int; emb_table: (vocab, d_model) -> (batch, seq, d_model)."""
    batch, seq = ids.shape
    vocab, d_model = emb_table.shape
    out_dtype = emb_table.dtype
    itemsize = jnp.dtype(emb_table.dtype).itemsize
    scale = float(math.sqrt(d_model))

    n_tok = batch * seq
    table_bytes = vocab * d_model * itemsize
    gather_bytes = n_tok * d_model * itemsize

    # --- generation-aware VMEM budget (v5e/v6e: 128 MiB; v7x: 64 MiB per TC) ---
    try:
        vmem_cap = int(pltpu.get_tpu_info().vmem_capacity_bytes)
    except Exception:
        vmem_cap = 64 << 20  # conservative (v7x per-TC)
    vmem_budget = min(vmem_cap - (16 << 20), int(0.75 * vmem_cap))

    # --- tokens per grid step ---
    if tile is None:
        tile = 256
        # Keep >= 2 grid steps when possible so the "parallel" axis can feed both
        # TensorCores on v7x; otherwise grow the tile to amortize per-step overhead.
        while tile > 8 and (n_tok + tile - 1) // tile < 2:
            tile //= 2
        tile = min(tile, ((n_tok + 7) // 8) * 8)
    tile = max(8, (tile // 8) * 8)

    n_pad = ((n_tok + tile - 1) // tile) * tile
    grid = (n_pad // tile,)
    out_block_bytes = tile * d_model * itemsize

    # --- path selection ---
    # Resident table only when it fits the budget AND reading the whole table is
    # not much more HBM traffic than the rows actually gathered.
    if table_in_vmem is None:
        fits = table_bytes + 2 * out_block_bytes <= vmem_budget
        worth = table_bytes <= max(2 << 20, 8 * gather_bytes)
        table_in_vmem = fits and worth

    # Gather-pipeline depth: local VMEM copies need little; HBM row fetches are
    # latency-bound (~1 us each) so keep many in flight.
    if depth is None:
        depth = 8 if table_in_vmem else 32
    depth = max(1, min(depth, tile, 64))

    kernel = functools.partial(_embed_gather_kernel, tile=tile, scale=scale, depth=depth)

    if table_in_vmem:
        tbl_index_map = lambda i, ids_ref: (0, 0)
        try:
            # Constant-index block: nothing to prefetch, so single-buffer it and
            # halve the table's VMEM footprint.
            tbl_spec = pl.BlockSpec((vocab, d_model), tbl_index_map,
                                    pipeline_mode=pl.Buffered(1))
            table_copies = 1
        except (TypeError, ValueError):
            tbl_spec = pl.BlockSpec((vocab, d_model), tbl_index_map)
            table_copies = 2
        in_specs = [tbl_spec]
        live_vmem = table_copies * table_bytes + 2 * out_block_bytes
        read_bytes = table_bytes
    else:
        in_specs = [pl.BlockSpec(memory_space=pl.ANY)]   # raw HBM ref, manual DMA
        live_vmem = 2 * out_block_bytes
        read_bytes = n_pad * d_model * itemsize

    scratch_shapes = [pltpu.SemaphoreType.DMA((depth,))]

    vmem_limit_bytes = None
    if live_vmem > (16 << 20):  # v5e default scoped limit; v6e/v7x default 32 MiB
        vmem_limit_bytes = int(min(live_vmem + (8 << 20), vmem_cap - (8 << 20)))

    cost = pl.CostEstimate(
        flops=n_pad * d_model,
        transcendentals=0,
        bytes_accessed=read_bytes + n_pad * 4 + n_pad * d_model * itemsize,
    )

    # Flatten, clamp (guards the data-dependent row gather) and pad the ids.
    # TODO(synk): for very long sequences (>~64K tokens) feed ids per-tile via a
    # blocked SMEM input instead of prefetching the whole id vector into SMEM.
    flat_ids = jnp.clip(ids.reshape(n_tok).astype(jnp.int32), 0, vocab - 1)
    flat_ids = jnp.pad(flat_ids, (0, n_pad - n_tok))

    out_flat = pl.pallas_call(
        kernel,
        out_shape=jax.ShapeDtypeStruct((n_pad, d_model), out_dtype),
        grid_spec=pltpu.PrefetchScalarGridSpec(
            num_scalar_prefetch=1,             # flat ids -> SMEM, readable in-kernel
            grid=grid,
            in_specs=in_specs,
            out_specs=pl.BlockSpec((tile, d_model), lambda i, ids_ref: (i, 0)),
            scratch_shapes=scratch_shapes,
        ),
        compiler_params=pltpu.CompilerParams(
            dimension_semantics=("parallel",),  # tokens independent -> both TCs on v7x
            vmem_limit_bytes=vmem_limit_bytes,
        ),
        cost_estimate=cost,
    )(flat_ids, emb_table)

    return out_flat[:n_tok].reshape(batch, seq, d_model)


if __name__ == "__main__":
    def check(batch, seq, vocab_size, d_model, key):
        k_ids, k_emb = jax.random.split(key)
        # Deterministic synthetic parameters (torch.nn.Embedding init ~ N(0,1)).
        emb_table = jax.random.normal(k_emb, (vocab_size, d_model), dtype=jnp.float32)
        x = jax.random.randint(k_ids, (batch, seq), minval=0, maxval=vocab_size,
                               dtype=jnp.int32)
        ref = jnp.take(emb_table, x, axis=0) * math.sqrt(d_model)

        # Fast path: table resident in VMEM (auto-selected at these sizes).
        out_a = jax.block_until_ready(input_embeddings(x, emb_table))
        assert out_a.shape == (batch, seq, d_model)
        assert jnp.allclose(out_a, ref, atol=1e-5, rtol=1e-5)

        # Large-vocab path: rows gathered straight from HBM into the output block.
        out_b = jax.block_until_ready(input_embeddings(x, emb_table,
                                                       table_in_vmem=False))
        assert jnp.allclose(out_b, ref, atol=1e-5, rtol=1e-5)

    key = jax.random.PRNGKey(0)
    k0, k1 = jax.random.split(key)
    check(2, 8, 32, 128, k0)      # tiny shapes: tile=8, 2 grid steps
    check(2, 136, 512, 256, k1)   # exercises tile=256, depth=32, padded tail
    print("KERNEL_OK")
</pallas_src>

<mosaic_0001>
module attributes {stable_mosaic.version = 11 : i64} {
  func.func @_embed_gather_kernel(%arg0: i32, %arg1: memref<16xi32, #tpu.memory_space<smem>>, %arg2: memref<32x128xf32, #tpu.memory_space<vmem>>, %arg3: memref<8x128xf32, #tpu.memory_space<vmem>>, %arg4: memref<8x!tpu.dma_semaphore, #tpu.memory_space<semaphore_mem>>) attributes {dimension_semantics = [#tpu.dimension_semantics<parallel>], iteration_bounds = array<i64: 2>, scalar_prefetch = 1 : i64, scratch_operands = 1 : i64, tpu.core_type = #tpu.core_type<tc>, window_params = [{pipeline_mode = #tpu.pipeline_mode<synchronous>, transform_indices = @transform_0, window_bounds = array<i64: 32, 128>}, {transform_indices = @transform_1, window_bounds = array<i64: 8, 128>}]} {
    %c8_i32 = arith.constant 8 : i32
    %0 = arith.muli %arg0, %c8_i32 : i32
    %c0_i32 = arith.constant 0 : i32
    %1 = arith.addi %0, %c0_i32 : i32
    %2 = arith.index_cast %1 : i32 to index
    %3 = memref.load %arg1[%2] : memref<16xi32, #tpu.memory_space<smem>>
    %c0_i32_0 = arith.constant 0 : i32
    %c0_i32_1 = arith.constant 0 : i32
    %4 = tpu.memref_slice %arg2[%3, %c0_i32_1] : memref<32x128xf32, #tpu.memory_space<vmem>> -> memref<1x128xf32, #tpu.memory_space<vmem>>
    %c0_i32_2 = arith.constant 0 : i32
    %c0_i32_3 = arith.constant 0 : i32
    %5 = tpu.memref_slice %arg3[%c0_i32_2, %c0_i32_3] : memref<8x128xf32, #tpu.memory_space<vmem>> -> memref<1x128xf32, #tpu.memory_space<vmem>>
    %6 = tpu.memref_slice %arg4[%c0_i32_0] : memref<8x!tpu.dma_semaphore, #tpu.memory_space<semaphore_mem>> -> memref<1x!tpu.dma_semaphore, #tpu.memory_space<semaphore_mem>>
    %7 = tpu.memref_squeeze %6 : memref<1x!tpu.dma_semaphore, #tpu.memory_space<semaphore_mem>> -> memref<!tpu.dma_semaphore, #tpu.memory_space<semaphore_mem>>
    tpu.enqueue_dma source(%4 : memref<1x128xf32, #tpu.memory_space<vmem>>) target(%5 : memref<1x128xf32, #tpu.memory_space<vmem>>) target_semaphore(%7 : memref<!tpu.dma_semaphore, #tpu.memory_space<semaphore_mem>>)
    %c1_i32 = arith.constant 1 : i32
    %8 = arith.addi %0, %c1_i32 : i32
    %9 = arith.index_cast %8 : i32 to index
    %10 = memref.load %arg1[%9] : memref<16xi32, #tpu.memory_space<smem>>
    %c1_i32_4 = arith.constant 1 : i32
    %c0_i32_5 = arith.constant 0 : i32
    %11 = tpu.memref_slice %arg2[%10, %c0_i32_5] : memref<32x128xf32, #tpu.memory_space<vmem>> -> memref<1x128xf32, #tpu.memory_space<vmem>>
    %c1_i32_6 = arith.constant 1 : i32
    %c0_i32_7 = arith.constant 0 : i32
    %12 = tpu.memref_slice %arg3[%c1_i32_6, %c0_i32_7] : memref<8x128xf32, #tpu.memory_space<vmem>> -> memref<1x128xf32, #tpu.memory_space<vmem>>
    %13 = tpu.memref_slice %arg4[%c1_i32_4] : memref<8x!tpu.dma_semaphore, #tpu.memory_space<semaphore_mem>> -> memref<1x!tpu.dma_semaphore, #tpu.memory_space<semaphore_mem>>
    %14 = tpu.memref_squeeze %13 : memref<1x!tpu.dma_semaphore, #tpu.memory_space<semaphore_mem>> -> memref<!tpu.dma_semaphore, #tpu.memory_space<semaphore_mem>>
    tpu.enqueue_dma source(%11 : memref<1x128xf32, #tpu.memory_space<vmem>>) target(%12 : memref<1x128xf32, #tpu.memory_space<vmem>>) target_semaphore(%14 : memref<!tpu.dma_semaphore, #tpu.memory_space<semaphore_mem>>)
    %c2_i32 = arith.constant 2 : i32
    %15 = arith.addi %0, %c2_i32 : i32
    %16 = arith.index_cast %15 : i32 to index
    %17 = memref.load %arg1[%16] : memref<16xi32, #tpu.memory_space<smem>>
    %c2_i32_8 = arith.constant 2 : i32
    %c0_i32_9 = arith.constant 0 : i32
    %18 = tpu.memref_slice %arg2[%17, %c0_i32_9] : memref<32x128xf32, #tpu.memory_space<vmem>> -> memref<1x128xf32, #tpu.memory_space<vmem>>
    %c2_i32_10 = arith.constant 2 : i32
    %c0_i32_11 = arith.constant 0 : i32
    %19 = tpu.memref_slice %arg3[%c2_i32_10, %c0_i32_11] : memref<8x128xf32, #tpu.memory_space<vmem>> -> memref<1x128xf32, #tpu.memory_space<vmem>>
    %20 = tpu.memref_slice %arg4[%c2_i32_8] : memref<8x!tpu.dma_semaphore, #tpu.memory_space<semaphore_mem>> -> memref<1x!tpu.dma_semaphore, #tpu.memory_space<semaphore_mem>>
    %21 = tpu.memref_squeeze %20 : memref<1x!tpu.dma_semaphore, #tpu.memory_space<semaphore_mem>> -> memref<!tpu.dma_semaphore, #tpu.memory_space<semaphore_mem>>
    tpu.enqueue_dma source(%18 : memref<1x128xf32, #tpu.memory_space<vmem>>) target(%19 : memref<1x128xf32, #tpu.memory_space<vmem>>) target_semaphore(%21 : memref<!tpu.dma_semaphore, #tpu.memory_space<semaphore_mem>>)
    %c3_i32 = arith.constant 3 : i32
    %22 = arith.addi %0, %c3_i32 : i32
    %23 = arith.index_cast %22 : i32 to index
    %24 = memref.load %arg1[%23] : memref<16xi32, #tpu.memory_space<smem>>
    %c3_i32_12 = arith.constant 3 : i32
    %c0_i32_13 = arith.constant 0 : i32
    %25 = tpu.memref_slice %arg2[%24, %c0_i32_13] : memref<32x128xf32, #tpu.memory_space<vmem>> -> memref<1x128xf32, #tpu.memory_space<vmem>>
    %c3_i32_14 = arith.constant 3 : i32
    %c0_i32_15 = arith.constant 0 : i32
    %26 = tpu.memref_slice %arg3[%c3_i32_14, %c0_i32_15] : memref<8x128xf32, #tpu.memory_space<vmem>> -> memref<1x128xf32, #tpu.memory_space<vmem>>
    %27 = tpu.memref_slice %arg4[%c3_i32_12] : memref<8x!tpu.dma_semaphore, #tpu.memory_space<semaphore_mem>> -> memref<1x!tpu.dma_semaphore, #tpu.memory_space<semaphore_mem>>
    %28 = tpu.memref_squeeze %27 : memref<1x!tpu.dma_semaphore, #tpu.memory_space<semaphore_mem>> -> memref<!tpu.dma_semaphore, #tpu.memory_space<semaphore_mem>>
    tpu.enqueue_dma source(%25 : memref<1x128xf32, #tpu.memory_space<vmem>>) target(%26 : memref<1x128xf32, #tpu.memory_space<vmem>>) target_semaphore(%28 : memref<!tpu.dma_semaphore, #tpu.memory_space<semaphore_mem>>)
    %c4_i32 = arith.constant 4 : i32
    %29 = arith.addi %0, %c4_i32 : i32
    %30 = arith.index_cast %29 : i32 to index
    %31 = memref.load %arg1[%30] : memref<16xi32, #tpu.memory_space<smem>>
    %c4_i32_16 = arith.constant 4 : i32
    %c0_i32_17 = arith.constant 0 : i32
    %32 = tpu.memref_slice %arg2[%31, %c0_i32_17] : memref<32x128xf32, #tpu.memory_space<vmem>> -> memref<1x128xf32, #tpu.memory_space<vmem>>
    %c4_i32_18 = arith.constant 4 : i32
    %c0_i32_19 = arith.constant 0 : i32
    %33 = tpu.memref_slice %arg3[%c4_i32_18, %c0_i32_19] : memref<8x128xf32, #tpu.memory_space<vmem>> -> memref<1x128xf32, #tpu.memory_space<vmem>>
    %34 = tpu.memref_slice %arg4[%c4_i32_16] : memref<8x!tpu.dma_semaphore, #tpu.memory_space<semaphore_mem>> -> memref<1x!tpu.dma_semaphore, #tpu.memory_space<semaphore_mem>>
    %35 = tpu.memref_squeeze %34 : memref<1x!tpu.dma_semaphore, #tpu.memory_space<semaphore_mem>> -> memref<!tpu.dma_semaphore, #tpu.memory_space<semaphore_mem>>
    tpu.enqueue_dma source(%32 : memref<1x128xf32, #tpu.memory_space<vmem>>) target(%33 : memref<1x128xf32, #tpu.memory_space<vmem>>) target_semaphore(%35 : memref<!tpu.dma_semaphore, #tpu.memory_space<semaphore_mem>>)
    %c5_i32 = arith.constant 5 : i32
    %36 = arith.addi %0, %c5_i32 : i32
    %37 = arith.index_cast %36 : i32 to index
    %38 = memref.load %arg1[%37] : memref<16xi32, #tpu.memory_space<smem>>
    %c5_i32_20 = arith.constant 5 : i32
    %c0_i32_21 = arith.constant 0 : i32
    %39 = tpu.memref_slice %arg2[%38, %c0_i32_21] : memref<32x128xf32, #tpu.memory_space<vmem>> -> memref<1x128xf32, #tpu.memory_space<vmem>>
    %c5_i32_22 = arith.constant 5 : i32
    %c0_i32_23 = arith.constant 0 : i32
    %40 = tpu.memref_slice %arg3[%c5_i32_22, %c0_i32_23] : memref<8x128xf32, #tpu.memory_space<vmem>> -> memref<1x128xf32, #tpu.memory_space<vmem>>
    %41 = tpu.memref_slice %arg4[%c5_i32_20] : memref<8x!tpu.dma_semaphore, #tpu.memory_space<semaphore_mem>> -> memref<1x!tpu.dma_semaphore, #tpu.memory_space<semaphore_mem>>
    %42 = tpu.memref_squeeze %41 : memref<1x!tpu.dma_semaphore, #tpu.memory_space<semaphore_mem>> -> memref<!tpu.dma_semaphore, #tpu.memory_space<semaphore_mem>>
    tpu.enqueue_dma source(%39 : memref<1x128xf32, #tpu.memory_space<vmem>>) target(%40 : memref<1x128xf32, #tpu.memory_space<vmem>>) target_semaphore(%42 : memref<!tpu.dma_semaphore, #tpu.memory_space<semaphore_mem>>)
    %c6_i32 = arith.constant 6 : i32
    %43 = arith.addi %0, %c6_i32 : i32
    %44 = arith.index_cast %43 : i32 to index
    %45 = memref.load %arg1[%44] : memref<16xi32, #tpu.memory_space<smem>>
    %c6_i32_24 = arith.constant 6 : i32
    %c0_i32_25 = arith.constant 0 : i32
    %46 = tpu.memref_slice %arg2[%45, %c0_i32_25] : memref<32x128xf32, #tpu.memory_space<vmem>> -> memref<1x128xf32, #tpu.memory_space<vmem>>
    %c6_i32_26 = arith.constant 6 : i32
    %c0_i32_27 = arith.constant 0 : i32
    %47 = tpu.memref_slice %arg3[%c6_i32_26, %c0_i32_27] : memref<8x128xf32, #tpu.memory_space<vmem>> -> memref<1x128xf32, #tpu.memory_space<vmem>>
    %48 = tpu.memref_slice %arg4[%c6_i32_24] : memref<8x!tpu.dma_semaphore, #tpu.memory_space<semaphore_mem>> -> memref<1x!tpu.dma_semaphore, #tpu.memory_space<semaphore_mem>>
    %49 = tpu.memref_squeeze %48 : memref<1x!tpu.dma_semaphore, #tpu.memory_space<semaphore_mem>> -> memref<!tpu.dma_semaphore, #tpu.memory_space<semaphore_mem>>
    tpu.enqueue_dma source(%46 : memref<1x128xf32, #tpu.memory_space<vmem>>) target(%47 : memref<1x128xf32, #tpu.memory_space<vmem>>) target_semaphore(%49 : memref<!tpu.dma_semaphore, #tpu.memory_space<semaphore_mem>>)
    %c7_i32 = arith.constant 7 : i32
    %50 = arith.addi %0, %c7_i32 : i32
    %51 = arith.index_cast %50 : i32 to index
    %52 = memref.load %arg1[%51] : memref<16xi32, #tpu.memory_space<smem>>
    %c7_i32_28 = arith.constant 7 : i32
    %c0_i32_29 = arith.constant 0 : i32
    %53 = tpu.memref_slice %arg2[%52, %c0_i32_29] : memref<32x128xf32, #tpu.memory_space<vmem>> -> memref<1x128xf32, #tpu.memory_space<vmem>>
    %c7_i32_30 = arith.constant 7 : i32
    %c0_i32_31 = arith.constant 0 : i32
    %54 = tpu.memref_slice %arg3[%c7_i32_30, %c0_i32_31] : memref<8x128xf32, #tpu.memory_space<vmem>> -> memref<1x128xf32, #tpu.memory_space<vmem>>
    %55 = tpu.memref_slice %arg4[%c7_i32_28] : memref<8x!tpu.dma_semaphore, #tpu.memory_space<semaphore_mem>> -> memref<1x!tpu.dma_semaphore, #tpu.memory_space<semaphore_mem>>
    %56 = tpu.memref_squeeze %55 : memref<1x!tpu.dma_semaphore, #tpu.memory_space<semaphore_mem>> -> memref<!tpu.dma_semaphore, #tpu.memory_space<semaphore_mem>>
    tpu.enqueue_dma source(%53 : memref<1x128xf32, #tpu.memory_space<vmem>>) target(%54 : memref<1x128xf32, #tpu.memory_space<vmem>>) target_semaphore(%56 : memref<!tpu.dma_semaphore, #tpu.memory_space<semaphore_mem>>)
    %c0_i32_32 = arith.constant 0 : i32
    %c8_i32_33 = arith.constant 8 : i32
    %57 = arith.addi %c0_i32_32, %c8_i32_33 : i32
    %c1_i32_34 = arith.constant 1 : i32
    scf.for %arg5 = %c0_i32_32 to %57 step %c1_i32_34  : i32 {
      %c8_i32_39 = arith.constant 8 : i32
      %62 = arith.remsi %arg5, %c8_i32_39 : i32
      %c8_i32_40 = arith.constant 8 : i32
      %63 = arith.addi %arg5, %c8_i32_40 : i32
      %64 = arith.addi %0, %arg5 : i32
      %65 = arith.index_cast %64 : i32 to index
      %66 = memref.load %arg1[%65] : memref<16xi32, #tpu.memory_space<smem>>
      %c7_i32_41 = arith.constant 7 : i32
      %67 = arith.minsi %63, %c7_i32_41 : i32
      %68 = arith.addi %0, %67 : i32
      %69 = arith.index_cast %68 : i32 to index
      %70 = memref.load %arg1[%69] : memref<16xi32, #tpu.memory_space<smem>>
      %c0_i32_42 = arith.constant 0 : i32
      %71 = tpu.memref_slice %arg2[%66, %c0_i32_42] : memref<32x128xf32, #tpu.memory_space<vmem>> -> memref<1x128xf32, #tpu.memory_space<vmem>>
      %c0_i32_43 = arith.constant 0 : i32
      %72 = tpu.memref_slice %arg3[%arg5, %c0_i32_43] : memref<8x128xf32, #tpu.memory_space<vmem>> -> memref<1x128xf32, #tpu.memory_space<vmem>>
      %73 = tpu.memref_slice %arg4[%62] : memref<8x!tpu.dma_semaphore, #tpu.memory_space<semaphore_mem>> -> memref<1x!tpu.dma_semaphore, #tpu.memory_space<semaphore_mem>>
      %74 = tpu.memref_squeeze %73 : memref<1x!tpu.dma_semaphore, #tpu.memory_space<semaphore_mem>> -> memref<!tpu.dma_semaphore, #tpu.memory_space<semaphore_mem>>
      tpu.wait_dma2 semaphore(%74 : memref<!tpu.dma_semaphore, #tpu.memory_space<semaphore_mem>>) src(%71 : memref<1x128xf32, #tpu.memory_space<vmem>>) dst(%72 : memref<1x128xf32, #tpu.memory_space<vmem>>)
      %c8_i32_44 = arith.constant 8 : i32
      %75 = arith.cmpi slt, %63, %c8_i32_44 : i32
      %76 = arith.extui %75 : i1 to i32
      %c0_i32_45 = arith.constant 0 : i32
      %77 = arith.cmpi ne, %76, %c0_i32_45 : i32
      scf.if %77 {
        %c0_i32_46 = arith.constant 0 : i32
        %78 = tpu.memref_slice %arg2[%70, %c0_i32_46] : memref<32x128xf32, #tpu.memory_space<vmem>> -> memref<1x128xf32, #tpu.memory_space<vmem>>
        %c0_i32_47 = arith.constant 0 : i32
        %79 = tpu.memref_slice %arg3[%63, %c0_i32_47] : memref<8x128xf32, #tpu.memory_space<vmem>> -> memref<1x128xf32, #tpu.memory_space<vmem>>
        %80 = tpu.memref_slice %arg4[%62] : memref<8x!tpu.dma_semaphore, #tpu.memory_space<semaphore_mem>> -> memref<1x!tpu.dma_semaphore, #tpu.memory_space<semaphore_mem>>
        %81 = tpu.memref_squeeze %80 : memref<1x!tpu.dma_semaphore, #tpu.memory_space<semaphore_mem>> -> memref<!tpu.dma_semaphore, #tpu.memory_space<semaphore_mem>>
        tpu.enqueue_dma source(%78 : memref<1x128xf32, #tpu.memory_space<vmem>>) target(%79 : memref<1x128xf32, #tpu.memory_space<vmem>>) target_semaphore(%81 : memref<!tpu.dma_semaphore, #tpu.memory_space<semaphore_mem>>)
      } else {
      }
    }
    %c8_i32_35 = arith.constant 8 : i32
    %c0 = arith.constant 0 : index
    %c0_36 = arith.constant 0 : index
    %58 = vector.load %arg3[%c0, %c0_36] : memref<8x128xf32, #tpu.memory_space<vmem>>, vector<8x128xf32>
    %cst = arith.constant 11.3137083 : f32
    %59 = vector.broadcast %cst : f32 to vector<8x128xf32>
    %60 = arith.mulf %58, %59 : vector<8x128xf32>
    %c0_37 = arith.constant 0 : index
    %c0_38 = arith.constant 0 : index
    %61 = vector.load %arg3[%c0_37, %c0_38] : memref<8x128xf32, #tpu.memory_space<vmem>>, vector<8x128xf32>
    tpu.vector_store %arg3[%c0_37, %c0_38], %60 {strides = array<i32>} : memref<8x128xf32, #tpu.memory_space<vmem>>, vector<8x128xf32>,
    return
  }
  func.func @transform_0(%arg0: i32, %arg1: memref<16xi32, #tpu.memory_space<smem>>) -> (i32, i32) {
    %c0_i32 = arith.constant 0 : i32
    %c0_i32_0 = arith.constant 0 : i32
    %c0_i32_1 = arith.constant 0 : i32
    return %c0_i32, %c0_i32_0 : i32, i32
  }
  func.func @transform_1(%arg0: i32, %arg1: memref<16xi32, #tpu.memory_space<smem>>) -> (i32, i32) {
    %c0_i32 = arith.constant 0 : i32
    %c0_i32_0 = arith.constant 0 : i32
    return %arg0, %c0_i32 : i32, i32
  }
}

</mosaic_0001>

<bundles_post_ra>
// kernel: tpu_custom_call.1
= control target key start
LH: loop header
LB: loop body
LE: loop exit
PB: predicated region body
PF: predicated region fallthrough
CT: control target
= control target key end

     0   :  { %s1052_s9 = smov [#allocation4]   ;;  %s1216_s0 = inlined_call_operand.hbm [shape: s32[16], index: 0, kind: input, shape index: {}]   ;;  %s1217_s1 = inlined_call_operand.hbm [shape: f32[32,128], index: 1, kind: input, shape index: {}]   ;;  %s1218_s2 = inlined_call_operand.hbm [shape: f32[16,128], index: 2, kind: output, shape index: {}]  }
   0x1   :  { %8 = dma.hbm_to_smem %s1216_s0, 16, %s1052_s9, [#allocation3] }
   0x2   :  { %1020 = dma.done.wait [#allocation3], 16 }
   0x3   :  { %1021 = vsyncadd [#allocation3], 4294967280 }
   0x4   :  { %10 = sfence }
   0x5   :  { %11 = vsyncpa [#allocation6], 0 }
   0x6   :  { %12 = vsyncpa [#allocation7], 0 }
   0x7   :  { %14 = vsyncpa [#allocation7 + $0x1], 0  ;;  %s1075_s12 = smov 0   ;;  %s1077_s13 = smov 0  }
   0x8   :  { %s1079_s14 = smov 0   ;;  %s1081_s15 = smov 0  }
   0x9 LB: > { %s1096_s0 = sadd.s32 4294967295, %s1046_s15   ;;  %s842_s16 = sadd.s32 4294967294, %s1046_s15   ;;  %s1046_s15 = sphi %s1081_s15, %s1226_s15   ;;  %s1042_s14 = sphi %s1079_s14, %s1225_s14   ;;  %s1038_s13 = sphi %s1077_s13, %s1224_s13   ;;  %s1034_s12 = sphi %s1075_s12, %s1223_s12  }
   0xa   : > { %s1100_s17 = sadd.s32 1, %s1046_s15   ;;  %s48_s18 = sadd.s32 1, %s1042_s14 }
   0xb   : > { %s45_s19 = ssub.s32 %s1046_s15, %s1100_s17  ;;  %p58_p0 = scmp.ne.s32.totalorder %s1042_s14, %s1038_s13 }
   0xc   : > { %p46_p1 = scmp.eq.s32.totalorder %s45_s19, 0  ;;  %p59_p2 = scmp.eq.s32.totalorder %s1096_s0, 1 }
   0xd   : > { %p64_p3 = scmp.ne.s32.totalorder %s1038_s13, %s1034_s12  ;;  %p65_p4 = scmp.eq.s32.totalorder %s842_s16, 1 }
   0xe   : > { %s1111_s20 = scalar_select %p46_p1, %s1042_s14, %s48_s18  }
   0xf   : > { %p1113_p5 = por %p59_p2, %p58_p0  ;;  %p1117_p6 = por %p65_p4, %p64_p3 }
  0x10   : > { %p843_p7 = scmp.ge.s32.totalorder %s1046_s15, 1  ;;  %p72_p8 = scmp.lt.s32.totalorder %s1046_s15, 3 }
  0x11   : > { %s1220_s22 = scalar_select %p1117_p6, 1, 0 }
  0x12   : > { %p893_p9 = scmp.eq.s32.totalorder %s1096_s0, 0  ;;  %p1124_p10 = pnand %p843_p7, %p72_p8 }
  0x13   : > { %s1053_s24 = smov [#allocation5]  }
  0x14   : > { %s84_s25 = sshll.u32 %s1053_s24, 4  ;;  %p885_p11 = pneg %p1124_p10  ;;  %s85_s25 = int_to_ptr.vmem [resolvable:$true] %s84_s25 }
  0x15   : > { %s959_s26 = scalar_lea.vmem %s85_s25, 512  ;;  %p967_p3 = scmp.lt.s32.totalorder %s85_s25, %s85_s25 }
  0x16   : > { %p886_p12 = pnand %p893_p9, %p885_p11  ;;  %p960_p0 = scmp.ne.s32.totalorder %s85_s25, %s959_s26 }
  0x17   : > { %p968_p4 = scmp.lt.s32.totalorder %s959_s26, %s959_s26 }
  0x18   : > { %p950_p13 = pneg %p886_p12 }
  0x19   : > { %p969_p6 = por %p968_p4, %p967_p3 }
  0x1a   : > { %p962_p1 = pnand %p960_p0, %p950_p13 }
  0x1c   : > { %p963_p2 = pneg %p962_p1 }
  0x1e   : > { %p970_p7 = pnand %p969_p6, %p963_p2 }
  0x20   : > { %973 = shalt.err (!%p970_p7)
}
  0x21   : > { %s1054_s27 = smov 128   ;;  %s1055_s28 = smov 8  }
  0x22   : > { %888 = dma.hbm_to_vmem [thread:$0]  (!%p886_p12), %s1217_s1, 512, %s85_s25, [#allocation6], %s1054_s27, %s1054_s27, %s1055_s28  }
  0x23   : > { %100 = sbr.rel (%p1124_p10) target bundleno = 168 (0xa8), region = 24 }
  0x28   : > { %1023 = dma.done.wait (%p893_p9), [#allocation6], 512  }
  0x29   : > { %1025 = vsyncadd (%p893_p9), [#allocation6], 4294966784  ;;  %s1142_s3 = sshll.u32 %s1096_s0, 3  ;;  %s112_s4 = sand.u32 1, %s1038_s13  }
  0x2a   : > { %s116_s5 = sld [smem:[#allocation4 + %s1142_s3]]  ;;  %s847_s6 = sshll.u32 %s112_s4, 3 }
  0x2b   : > { %s1148_s8 = scalar_lea.vmem [#allocation8], %s847_s6 }
  0x30   : > { %s117_s7 = scalar_lea.vmem [#allocation5], %s116_s5 }
  0x31   : > { %v136_v0 = vld [vmem:[%s117_s7] sm:$0x1] }
  0x32   : > { %137 = vst [vmem:[%s1148_s8] sm:$0x1] %v136_v0 }
  0x33   : > { %163 = vsyncadd [#allocation2], 16  ;;  %s164_s9 = sadd.s32 1, %s1142_s3 }
  0x34   : > { %s165_s10 = sld [smem:[#allocation4 + %s164_s9]] }
  0x3a   : > { %s166_s11 = scalar_lea.vmem [#allocation5], %s165_s10 }
  0x3b   : > { %v187_v1 = vld [vmem:[%s166_s11] sm:$0x1] }
  0x3c   : > { %850 = vst [vmem:[%s1148_s8 + $0x1] sm:$0x1] %v187_v1 }
  0x3d   : > { %214 = vsyncadd [#allocation2 + $0x1], 16  ;;  %s215_s16 = sadd.s32 2, %s1142_s3 }
  0x3e   : > { %s216_s18 = sld [smem:[#allocation4 + %s215_s16]] }
  0x44   : > { %s217_s19 = scalar_lea.vmem [#allocation5], %s216_s18 }
  0x45   : > { %v238_v2 = vld [vmem:[%s217_s19] sm:$0x1] }
  0x46   : > { %852 = vst [vmem:[%s1148_s8 + $0x2] sm:$0x1] %v238_v2 }
  0x47   : > { %265 = vsyncadd [#allocation2 + $0x2], 16  ;;  %s266_s23 = sadd.s32 3, %s1142_s3 }
  0x48   : > { %s267_s24 = sld [smem:[#allocation4 + %s266_s23]] }
  0x4e   : > { %s268_s25 = scalar_lea.vmem [#allocation5], %s267_s24 }
  0x4f   : > { %v289_v3 = vld [vmem:[%s268_s25] sm:$0x1] }
  0x50   : > { %854 = vst [vmem:[%s1148_s8 + $0x3] sm:$0x1] %v289_v3 }
  0x51   : > { %316 = vsyncadd [#allocation2 + $0x3], 16  ;;  %s317_s26 = sadd.s32 4, %s1142_s3 }
  0x52   : > { %s318_s27 = sld [smem:[#allocation4 + %s317_s26]] }
  0x58   : > { %s319_s28 = scalar_lea.vmem [#allocation5], %s318_s27 }
  0x59   : > { %v340_v4 = vld [vmem:[%s319_s28] sm:$0x1] }
  0x5a   : > { %856 = vst [vmem:[%s1148_s8 + $0x4] sm:$0x1] %v340_v4 }
  0x5b   : > { %367 = vsyncadd [#allocation2 + $0x4], 16  ;;  %s368_s29 = sadd.s32 5, %s1142_s3 }
  0x5c   : > { %s369_s30 = sld [smem:[#allocation4 + %s368_s29]] }
  0x62   : > { %s370_s5 = scalar_lea.vmem [#allocation5], %s369_s30 }
  0x63   : > { %v391_v5 = vld [vmem:[%s370_s5] sm:$0x1] }
  0x64   : > { %858 = vst [vmem:[%s1148_s8 + $0x5] sm:$0x1] %v391_v5 }
  0x65   : > { %418 = vsyncadd [#allocation2 + $0x5], 16  ;;  %s419_s6 = sadd.s32 6, %s1142_s3 }
  0x66   : > { %s420_s7 = sld [smem:[#allocation4 + %s419_s6]] }
  0x6c   : > { %s421_s9 = scalar_lea.vmem [#allocation5], %s420_s7 }
  0x6d   : > { %v442_v6 = vld [vmem:[%s421_s9] sm:$0x1] }
  0x6e   : > { %860 = vst [vmem:[%s1148_s8 + $0x6] sm:$0x1] %v442_v6 }
  0x6f   : > { %469 = vsyncadd [#allocation2 + $0x6], 16  ;;  %s470_s10 = sadd.s32 7, %s1142_s3 }
  0x70   : > { %s471_s11 = sld [smem:[#allocation4 + %s470_s10]] }
  0x76   : > { %s472_s16 = scalar_lea.vmem [#allocation5], %s471_s11 }
  0x77   : > { %v493_v7 = vld [vmem:[%s472_s16] sm:$0x1] }
  0x78   : > { %862 = vst [vmem:[%s1148_s8 + $0x7] sm:$0x1] %v493_v7 }
  0x79   : > { %520 = vsyncadd [#allocation2 + $0x7], 16  ;;  %s1165_s18 = smov 0  }
  0x7a LB: >> { %p527_p6 = scmp.lt.s32.totalorder %s1050_s18, 0  ;;  %s528_s19 = ssub.s32 0, %s1050_s18  ;;  %s1050_s18 = sphi %s1165_s18, %s526_s18  }
  0x7b   : >> { %s863_s23 = smin.u32 %s1050_s18, %s528_s19  ;;  %s533_s24 = sadd.s32 8, %s1050_s18 }
  0x7c   : >> { %s530_s25 = sand.u32 7, %s863_s23   ;;  %p536_p8 = scmp.lt.s32.totalorder %s533_s24, 7 }
  0x7d   : >> { %s531_s26 = ssub.s32 0, %s530_s25 }
  0x7e   : >> { %s1228_s26 = smov (!%p527_p6, %s531_s26), %s530_s25 }
  0x7f   : >> { %s537_s27 = scalar_select %p536_p8, %s533_s24, 7 }
  0x80   : >> { %s540_s30 = scalar_lea.sflag [#allocation2], %s1228_s26 }
  0x81   : >> { %s538_s28 = sadd.s32 %s1142_s3, %s537_s27 }
  0x82   : >> { %s539_s29 = sld [smem:[#allocation4 + %s538_s28]] }
  0x83   : >> { %1026 = dma.done.wait %s540_s30, 16 }
  0x84   : >> { %1027 = vsyncadd %s540_s30, 4294967280  ;;  %p864_p9 = scmp.ge.s32.totalorder %s533_s24, 8 }
  0x85   : >> { %s728_s5 = scalar_lea.vmem (!%p864_p9), %s1148_s8, %s1050_s18 [#allocation8] }
  0x86   : >> { %547 = sbr.rel (%p864_p9) target bundleno = 142 (0x8e), region = 279 }
  0x88   : >> { %s548_s6 = scalar_lea.vmem (!%p864_p9), [#allocation5], %s539_s29 }
  0x8b   : >> { %v568_v8 = vld [vmem:[%s548_s6] sm:$0x1] }
  0x8c   : >> { %866 = vst [vmem:[%s728_s5 + $0x8] sm:$0x1] %v568_v8 }
  0x8d   : >> { %595 = vsyncadd %s540_s30, 16 }
  0x8e PF: >> { %s526_s18 = sadd.s32 1, %s1050_s18  }
  0x8f   : >> { %p523_p10 = scmp.ge.s32.totalorder %s526_s18, 8  }
  0x90   : > { %s868_s7 = sshll.u32 (%p523_p10), %s1096_s0, 7  ;;  %s613_s16 = sshll.u32 (%p523_p10), %s1148_s8, 4  ;;  %s614_s16 = int_to_ptr.vmem [resolvable:$true] %s613_s16 }
  0x91   : > { %525 = sbr.rel (!%p523_p10) target bundleno = 122 (0x7a), region = 464  ;;  %s1177_s11 = scalar_lea.hbm (%p523_p10), %s1218_s2, %s868_s7 }
  0x92   : > { %s600_s18 = scalar_lea.sflag (%p523_p10), [#allocation7], %s112_s4  ;;  %s974_s19 = scalar_lea.vmem (%p523_p10), %s614_s16, 128 }
  0x93   : > { %v596_v9 = vld [vmem:[%s1148_s8] sm:$0xff] (%p523_p10)  ;;  %p975_p11 = scmp.ne.s32.totalorder (%p523_p10), %s614_s16, %s974_s19  ;;  %s1056_s3 = smov (%p523_p10), [#allocation8]  }
  0x94   : > { %v597_v10 = vmul.f32 (%p523_p10), 11.313708, %v596_v9  ;;  %s978_s23 = sshll.u32 (%p523_p10), %s1056_s3, 4  ;;  %s979_s23 = int_to_ptr.vmem [resolvable:$false] %s978_s23 }
  0x95   : > { %p976_p12 = pnand (%p523_p10), %p975_p11, %p1113_p5  ;;  %s980_s0 = scalar_lea.vmem (%p523_p10), %s979_s23, 256 }
  0x96   : > { %598 = vst [vmem:[%s1148_s8] sm:$0xff] %v597_v10  ;;  %p981_p0 = scmp.lt.s32.totalorder %s614_s16, %s979_s23  ;;  %p982_p1 = scmp.lt.s32.totalorder %s980_s0, %s974_s19 }
  0x97   : > { %p977_p13 = pneg %p976_p12 }
  0x98   : > { %p983_p2 = por %p982_p1, %p981_p0 }
  0x9a   : > { %p984_p3 = pnand %p983_p2, %p977_p13 }
  0x9c   : > { %987 = shalt.err (!%p984_p3)
}
  0x9d   : > { %s988_s8 = scalar_lea.hbm %s1177_s11, 128  ;;  %s992_s25 = scalar_lea.hbm %s1218_s2, 256 }
  0x9e   : > { %p989_p4 = scmp.ne.s32.totalorder %s1177_s11, %s988_s8  ;;  %p993_p8 = scmp.lt.s32.totalorder %s1177_s11, %s1218_s2 }
  0x9f   : > { %p994_p9 = scmp.lt.s32.totalorder %s992_s25, %s988_s8 }
  0xa0   : > { %p990_p7 = pnand %p989_p4, %p1113_p5 }
  0xa1   : > { %p995_p10 = por %p994_p9, %p993_p8 }
  0xa2   : > { %p991_p6 = pneg %p990_p7 }
  0xa4   : > { %p996_p11 = pnand %p995_p10, %p991_p6 }
  0xa6   : > { %999 = shalt.err (!%p996_p11)
}
  0xa7   : > { %883 = dma.vmem_to_hbm [thread:$0]  (%p1113_p5), %s614_s16, 128, %s1177_s11, %s600_s18  }
  0xa8 PF: > { %p895_p12 = scmp.ge.s32.totalorder %s1046_s15, 2  ;;  %s625_s28 = sand.u32 1, %s1034_s12  }
  0xa9   : > { %p1222_p13 = scmp.ne.s32.totalorder %s1220_s22, 0  ;;  %s626_s29 = scalar_lea.sflag [#allocation7], %s625_s28 }
  0xab   : > { %p890_p0 = pnand %p895_p12, %p1222_p13 }
  0xad   : > { %p891_p1 = pneg %p890_p0 }
  0xaf   : > { %1029 = dma.done.wait (%p891_p1), %s626_s29, 128  }
  0xb0   : > { %1031 = vsyncadd (%p891_p1), %s626_s29, 4294967168  ;;  %p17_p2 = scmp.ge.s32.totalorder %s1100_s17, 4   ;;  %s1223_s12 = smov %s1038_s13 }
  0xb1   : > { %s1224_s13 = smov %s1042_s14  ;;  %s1225_s14 = smov %s1111_s20 }
  0xb2   : > { %s1226_s15 = smov %s1100_s17  ;;  %19 = sbr.rel (!%p17_p2) target bundleno = 9 (0x9), region = 475 }
  0xb7   :  { %631 = vsyncpa [#allocation6], 1 }
  0xb8   :  { %633 = vsyncpa [#allocation6 + $0x1], 1 }
  0xb9   :  { %634 = vsyncpa [#allocation7], 1 }
  0xba   :  { %636 = vsyncpa [#allocation7 + $0x1], 1 }
  0xbb   :  { %637 = vsyncmov [#allocation2] }
  0xbe   :  { %s638_s15 = vpop.sfrf %637 }
  0xbf   :  { %p871_p5 = scmp.ne.s32.totalorder %s638_s15, 0 }
  0xc1   :  { %642 = shalt.err (%p871_p5)  }
  0xc2   :  { %644 = vsyncmov [#allocation2 + $0x1] }
  0xc5   :  { %s645_s21 = vpop.sfrf %644 }
  0xc6   :  { %p872_p3 = scmp.ne.s32.totalorder %s645_s21, 0 }
  0xc8   :  { %649 = shalt.err (%p872_p3)  }
  0xc9   :  { %651 = vsyncmov [#allocation2 + $0x2] }
  0xcc   :  { %s652_s22 = vpop.sfrf %651 }
  0xcd   :  { %p873_p4 = scmp.ne.s32.totalorder %s652_s22, 0 }
  0xcf   :  { %656 = shalt.err (%p873_p4)  }
  0xd0   :  { %658 = vsyncmov [#allocation2 + $0x3] }
  0xd3   :  { %s659_s20 = vpop.sfrf %658 }
  0xd4   :  { %p874_p7 = scmp.ne.s32.totalorder %s659_s20, 0 }
  0xd6   :  { %663 = shalt.err (%p874_p7)  }
  0xd7   :  { %665 = vsyncmov [#allocation2 + $0x4] }
  0xda   :  { %s666_s1 = vpop.sfrf %665 }
  0xdb   :  { %p875_p6 = scmp.ne.s32.totalorder %s666_s1, 0 }
  0xdd   :  { %670 = shalt.err (%p875_p6)  }
  0xde   :  { %672 = vsyncmov [#allocation2 + $0x5] }
  0xe1   :  { %s673_s2 = vpop.sfrf %672 }
  0xe2   :  { %p876_p8 = scmp.ne.s32.totalorder %s673_s2, 0 }
  0xe4   :  { %677 = shalt.err (%p876_p8)  }
  0xe5   :  { %679 = vsyncmov [#allocation2 + $0x6] }
  0xe8   :  { %s680_s12 = vpop.sfrf %679 }
  0xe9   :  { %p877_p9 = scmp.ne.s32.totalorder %s680_s12, 0 }
  0xeb   :  { %684 = shalt.err (%p877_p9)  }
  0xec   :  { %686 = vsyncmov [#allocation2 + $0x7] }
  0xef   :  { %s687_s13 = vpop.sfrf %686 }
  0xf0   :  { %p878_p10 = scmp.ne.s32.totalorder %s687_s13, 0 }
  0xf2   :  { %691 = shalt.err (%p878_p10)  }

</bundles_post_ra>
